<compile_context>
chip_gen: v7x
topology: tpu7x:2x2x1
jax: 0.10.0
libtpu: 0.0.40
codegen_flags: <defaults>
</compile_context>

<pallas_src>
import jax
import jax.numpy as jnp
from jax.experimental import pallas as pl
from jax.experimental.pallas import tpu as pltpu


def _round_up(v, m):
    return ((v + m - 1) // m) * m


def _mlp_kernel(x_ref, w1_ref, b1_ref, w2_ref, b2_ref, w3_ref, b3_ref, o_ref):
    # First layer: (tb, D) @ (D, H1) -> f32 accumulate on the MXU.
    h1 = jnp.dot(x_ref[...], w1_ref[...], preferred_element_type=jnp.float32)
    h1 = jnp.maximum(h1 + b1_ref[...], 0.0)               # f32 epilogue (v5e-safe)

    # Second layer: cast activation to weight dtype for the MXU, accumulate f32.
    h2 = jnp.dot(h1.astype(w2_ref.dtype), w2_ref[...],
                 preferred_element_type=jnp.float32)
    h2 = jnp.maximum(h2 + b2_ref[...], 0.0)                # f32 epilogue

    # Output layer.
    out = jnp.dot(h2.astype(w3_ref.dtype), w3_ref[...],
                  preferred_element_type=jnp.float32)
    o_ref[...] = (out + b3_ref[...]).astype(o_ref.dtype)


def _choose_tile_b(B, D, C, in_itemsize, requested, sublane, weight_bytes):
    """Pick a batch tile: as large as possible under a conservative VMEM budget."""
    # Conservative streamed-buffer budget: fits comfortably inside v7x's 64 MiB
    # physical VMEM (and trivially inside v5e/v6e's 128 MiB).
    budget = 32 * 1024 * 1024
    # Double-buffered x tile (compute dtype) + double-buffered f32 output tile.
    per_row = 2 * D * in_itemsize + 2 * C * 4
    avail = max(budget - weight_bytes, per_row * sublane)
    tb_cap = max(sublane, (avail // per_row) // sublane * sublane)

    tb = max(sublane, min(requested, tb_cap))
    tb = (tb // sublane) * sublane
    # Never larger than the (sublane-padded) batch.
    tb = min(tb, _round_up(B, sublane))

    # v7x megacore: prefer >=2 grid steps when the halved tile is still large
    # enough (>=512 rows) to stay near the HBM roofline.
    if _round_up(B, tb) // tb < 2:
        half = _round_up((B + 1) // 2, sublane)
        if half >= 512:
            tb = half
    return tb


def mlp_forward(x, params, *, tile_b=1024, compute_dtype=jnp.bfloat16):
    """x: (B, input_dim). params: dict of w1,b1,w2,b2,w3,b3 (f32, (in,out) weights)."""
    B, D = x.shape
    H1 = params["w1"].shape[1]
    H2 = params["w2"].shape[1]
    C = params["w3"].shape[1]

    # bf16 (or requested dtype) for the HBM-dominant streams: x and weights.
    # Biases stay f32 and all post-matmul elementwise work is f32 in-kernel.
    w1 = params["w1"].astype(compute_dtype)
    w2 = params["w2"].astype(compute_dtype)
    w3 = params["w3"].astype(compute_dtype)
    b1 = params["b1"].astype(jnp.float32).reshape(1, H1)
    b2 = params["b2"].astype(jnp.float32).reshape(1, H2)
    b3 = params["b3"].astype(jnp.float32).reshape(1, C)
    xc = x.astype(compute_dtype)

    in_itemsize = jnp.dtype(compute_dtype).itemsize
    sublane = 16 if in_itemsize == 2 else 8

    # Weights + biases (double-buffered by the pipeline, even if resident).
    weight_bytes = 2 * ((D * H1 + H1 * H2 + H2 * C) * in_itemsize
                        + (H1 + H2 + C) * 4)

    tb = _choose_tile_b(B, D, C, in_itemsize, tile_b, sublane, weight_bytes)
    Bp = _round_up(B, tb)
    if Bp != B:
        xc = jnp.pad(xc, ((0, Bp - B), (0, 0)))

    grid = (Bp // tb,)

    cost = pl.CostEstimate(
        flops=2 * Bp * (D * H1 + H1 * H2 + H2 * C),
        transcendentals=0,
        bytes_accessed=Bp * D * in_itemsize + Bp * C * 4 + weight_bytes,
    )

    out = pl.pallas_call(
        _mlp_kernel,
        out_shape=jax.ShapeDtypeStruct((Bp, C), jnp.float32),
        grid_spec=pltpu.PrefetchScalarGridSpec(
            num_scalar_prefetch=0,
            grid=grid,
            in_specs=[
                pl.BlockSpec((tb, D), lambda i: (i, 0)),   # x tile (streamed)
                pl.BlockSpec((D, H1), lambda i: (0, 0)),   # w1 (resident)
                pl.BlockSpec((1, H1), lambda i: (0, 0)),   # b1 (f32)
                pl.BlockSpec((H1, H2), lambda i: (0, 0)),  # w2
                pl.BlockSpec((1, H2), lambda i: (0, 0)),   # b2
                pl.BlockSpec((H2, C), lambda i: (0, 0)),   # w3
                pl.BlockSpec((1, C), lambda i: (0, 0)),    # b3
            ],
            out_specs=pl.BlockSpec((tb, C), lambda i: (i, 0)),
        ),
        compiler_params=pltpu.CompilerParams(
            dimension_semantics=("parallel",),
            vmem_limit_bytes=48 * 1024 * 1024,
        ),
        cost_estimate=cost,
    )(xc, w1, b1, w2, b2, w3, b3)

    return out[:B]
    # TODO(synk): if input_dim grows into the thousands, add a second
    # "arbitrary" K grid axis with a (tb, H1) f32 accumulator instead of
    # shrinking tb.


def init_params(key, input_dim, n_class, dtype=jnp.float32):
    """Deterministic init mirroring nn.Linear shapes (stored as (in, out))."""
    ks = jax.random.split(key, 6)

    def linear(kw, kb, fan_in, fan_out):
        bound = 1.0 / jnp.sqrt(jnp.asarray(fan_in, dtype))
        w = jax.random.uniform(kw, (fan_in, fan_out), dtype, -bound, bound)
        b = jax.random.uniform(kb, (fan_out,), dtype, -bound, bound)
        return w, b

    w1, b1 = linear(ks[0], ks[1], input_dim, 30)
    w2, b2 = linear(ks[2], ks[3], 30, 20)
    w3, b3 = linear(ks[4], ks[5], 20, n_class)
    return {"w1": w1, "b1": b1, "w2": w2, "b2": b2, "w3": w3, "b3": b3}


def mlp_reference(x, p, compute_dtype=jnp.float32):
    """Same math path as the kernel (optionally with the same low-precision cast)."""
    xc = x.astype(compute_dtype)
    w1 = p["w1"].astype(compute_dtype)
    w2 = p["w2"].astype(compute_dtype)
    w3 = p["w3"].astype(compute_dtype)
    h1 = jnp.maximum(
        jnp.dot(xc, w1, preferred_element_type=jnp.float32) + p["b1"], 0.0)
    h2 = jnp.maximum(
        jnp.dot(h1.astype(compute_dtype), w2, preferred_element_type=jnp.float32)
        + p["b2"], 0.0)
    return (jnp.dot(h2.astype(compute_dtype), w3, preferred_element_type=jnp.float32)
            + p["b3"])


if __name__ == "__main__":
    key = jax.random.PRNGKey(0)
    k_x, k_p = jax.random.split(key)

    batch = 16
    input_dim = 32
    n_class = 5

    x = jax.random.normal(k_x, (batch, input_dim), jnp.float32)
    params = init_params(k_p, input_dim, n_class)

    out = mlp_forward(x, params)          # bf16 streams, f32 accumulation
    out = jax.block_until_ready(out)
    assert out.shape == (batch, n_class)
    assert out.dtype == jnp.float32

    # Exact-path reference (same bf16 casts, f32 accum).
    ref_bf16 = mlp_reference(x, params, compute_dtype=jnp.bfloat16)
    assert jnp.allclose(out, ref_bf16, atol=1e-3, rtol=1e-3), "mismatch vs bf16 reference"

    # Loose sanity check against the pure-f32 PyTorch-equivalent forward.
    ref_f32 = mlp_reference(x, params, compute_dtype=jnp.float32)
    assert jnp.allclose(out, ref_f32, atol=5e-2, rtol=5e-2), "mismatch vs f32 reference"

    print("KERNEL_OK")
</pallas_src>

<mosaic_0001>
module attributes {stable_mosaic.version = 11 : i64} {
  func.func @_mlp_kernel(%arg0: i32, %arg1: memref<16x32xbf16, #tpu.memory_space<vmem>>, %arg2: memref<32x30xbf16, #tpu.memory_space<vmem>>, %arg3: memref<1x30xf32, #tpu.memory_space<vmem>>, %arg4: memref<30x20xbf16, #tpu.memory_space<vmem>>, %arg5: memref<1x20xf32, #tpu.memory_space<vmem>>, %arg6: memref<20x5xbf16, #tpu.memory_space<vmem>>, %arg7: memref<1x5xf32, #tpu.memory_space<vmem>>, %arg8: memref<16x5xf32, #tpu.memory_space<vmem>>) attributes {dimension_semantics = [#tpu.dimension_semantics<parallel>], iteration_bounds = array<i64: 1>, scalar_prefetch = 0 : i64, scratch_operands = 0 : i64, tpu.core_type = #tpu.core_type<tc>, window_params = [{transform_indices = @transform_0, window_bounds = array<i64: 16, 32>}, {pipeline_mode = #tpu.pipeline_mode<synchronous>, transform_indices = @transform_1, window_bounds = array<i64: 32, 30>}, {pipeline_mode = #tpu.pipeline_mode<synchronous>, transform_indices = @transform_2, window_bounds = array<i64: 1, 30>}, {pipeline_mode = #tpu.pipeline_mode<synchronous>, transform_indices = @transform_3, window_bounds = array<i64: 30, 20>}, {pipeline_mode = #tpu.pipeline_mode<synchronous>, transform_indices = @transform_4, window_bounds = array<i64: 1, 20>}, {pipeline_mode = #tpu.pipeline_mode<synchronous>, transform_indices = @transform_5, window_bounds = array<i64: 20, 5>}, {pipeline_mode = #tpu.pipeline_mode<synchronous>, transform_indices = @transform_6, window_bounds = array<i64: 1, 5>}, {transform_indices = @transform_7, window_bounds = array<i64: 16, 5>}]} {
    %c0 = arith.constant 0 : index
    %c0_0 = arith.constant 0 : index
    %0 = vector.load %arg1[%c0, %c0_0] : memref<16x32xbf16, #tpu.memory_space<vmem>>, vector<16x32xbf16>
    %c0_1 = arith.constant 0 : index
    %c0_2 = arith.constant 0 : index
    %1 = vector.load %arg2[%c0_1, %c0_2] : memref<32x30xbf16, #tpu.memory_space<vmem>>, vector<32x30xbf16>
    %cst = arith.constant dense<0.000000e+00> : vector<16x30xf32>
    %2 = tpu.matmul %0, %1, %cst {dimension_numbers = #tpu.dot_dimension_numbers<[1], [0], [0], [1], [0, 0, 1, 1], [], []>} : vector<16x32xbf16>, vector<32x30xbf16>, vector<16x30xf32> -> vector<16x30xf32>
    %c0_3 = arith.constant 0 : index
    %c0_4 = arith.constant 0 : index
    %3 = vector.load %arg3[%c0_3, %c0_4] : memref<1x30xf32, #tpu.memory_space<vmem>>, vector<1x30xf32>
    %4 = vector.broadcast %3 : vector<1x30xf32> to vector<16x30xf32>
    %5 = arith.addf %2, %4 : vector<16x30xf32>
    %cst_5 = arith.constant 0.000000e+00 : f32
    %6 = vector.broadcast %cst_5 : f32 to vector<16x30xf32>
    %7 = arith.maximumf %5, %6 : vector<16x30xf32>
    %8 = arith.truncf %7 : vector<16x30xf32> to vector<16x30xbf16>
    %c0_6 = arith.constant 0 : index
    %c0_7 = arith.constant 0 : index
    %9 = vector.load %arg4[%c0_6, %c0_7] : memref<30x20xbf16, #tpu.memory_space<vmem>>, vector<30x20xbf16>
    %cst_8 = arith.constant dense<0.000000e+00> : vector<16x20xf32>
    %10 = tpu.matmul %8, %9, %cst_8 {dimension_numbers = #tpu.dot_dimension_numbers<[1], [0], [0], [1], [0, 0, 1, 1], [], []>} : vector<16x30xbf16>, vector<30x20xbf16>, vector<16x20xf32> -> vector<16x20xf32>
    %c0_9 = arith.constant 0 : index
    %c0_10 = arith.constant 0 : index
    %11 = vector.load %arg5[%c0_9, %c0_10] : memref<1x20xf32, #tpu.memory_space<vmem>>, vector<1x20xf32>
    %12 = vector.broadcast %11 : vector<1x20xf32> to vector<16x20xf32>
    %13 = arith.addf %10, %12 : vector<16x20xf32>
    %cst_11 = arith.constant 0.000000e+00 : f32
    %14 = vector.broadcast %cst_11 : f32 to vector<16x20xf32>
    %15 = arith.maximumf %13, %14 : vector<16x20xf32>
    %16 = arith.truncf %15 : vector<16x20xf32> to vector<16x20xbf16>
    %c0_12 = arith.constant 0 : index
    %c0_13 = arith.constant 0 : index
    %17 = vector.load %arg6[%c0_12, %c0_13] : memref<20x5xbf16, #tpu.memory_space<vmem>>, vector<20x5xbf16>
    %cst_14 = arith.constant dense<0.000000e+00> : vector<16x5xf32>
    %18 = tpu.matmul %16, %17, %cst_14 {dimension_numbers = #tpu.dot_dimension_numbers<[1], [0], [0], [1], [0, 0, 1, 1], [], []>} : vector<16x20xbf16>, vector<20x5xbf16>, vector<16x5xf32> -> vector<16x5xf32>
    %c0_15 = arith.constant 0 : index
    %c0_16 = arith.constant 0 : index
    %19 = vector.load %arg7[%c0_15, %c0_16] : memref<1x5xf32, #tpu.memory_space<vmem>>, vector<1x5xf32>
    %20 = vector.broadcast %19 : vector<1x5xf32> to vector<16x5xf32>
    %21 = arith.addf %18, %20 : vector<16x5xf32>
    %c0_17 = arith.constant 0 : index
    %c0_18 = arith.constant 0 : index
    %22 = vector.load %arg8[%c0_17, %c0_18] : memref<16x5xf32, #tpu.memory_space<vmem>>, vector<16x5xf32>
    tpu.vector_store %arg8[%c0_17, %c0_18], %21 {strides = array<i32>} : memref<16x5xf32, #tpu.memory_space<vmem>>, vector<16x5xf32>,
    return
  }
  func.func @transform_0(%arg0: i32) -> (i32, i32) {
    %c0_i32 = arith.constant 0 : i32
    %c0_i32_0 = arith.constant 0 : i32
    return %arg0, %c0_i32 : i32, i32
  }
  func.func @transform_1(%arg0: i32) -> (i32, i32) {
    %c0_i32 = arith.constant 0 : i32
    %c0_i32_0 = arith.constant 0 : i32
    %c0_i32_1 = arith.constant 0 : i32
    return %c0_i32, %c0_i32_0 : i32, i32
  }
  func.func @transform_2(%arg0: i32) -> (i32, i32) {
    %c0_i32 = arith.constant 0 : i32
    %c0_i32_0 = arith.constant 0 : i32
    %c0_i32_1 = arith.constant 0 : i32
    return %c0_i32, %c0_i32_0 : i32, i32
  }
  func.func @transform_3(%arg0: i32) -> (i32, i32) {
    %c0_i32 = arith.constant 0 : i32
    %c0_i32_0 = arith.constant 0 : i32
    %c0_i32_1 = arith.constant 0 : i32
    return %c0_i32, %c0_i32_0 : i32, i32
  }
  func.func @transform_4(%arg0: i32) -> (i32, i32) {
    %c0_i32 = arith.constant 0 : i32
    %c0_i32_0 = arith.constant 0 : i32
    %c0_i32_1 = arith.constant 0 : i32
    return %c0_i32, %c0_i32_0 : i32, i32
  }
  func.func @transform_5(%arg0: i32) -> (i32, i32) {
    %c0_i32 = arith.constant 0 : i32
    %c0_i32_0 = arith.constant 0 : i32
    %c0_i32_1 = arith.constant 0 : i32
    return %c0_i32, %c0_i32_0 : i32, i32
  }
  func.func @transform_6(%arg0: i32) -> (i32, i32) {
    %c0_i32 = arith.constant 0 : i32
    %c0_i32_0 = arith.constant 0 : i32
    %c0_i32_1 = arith.constant 0 : i32
    return %c0_i32, %c0_i32_0 : i32, i32
  }
  func.func @transform_7(%arg0: i32) -> (i32, i32) {
    %c0_i32 = arith.constant 0 : i32
    %c0_i32_0 = arith.constant 0 : i32
    return %arg0, %c0_i32 : i32, i32
  }
}

</mosaic_0001>

<bundles_post_ra>
// kernel: tpu_custom_call.1
= control target key start
LH: loop header
LB: loop body
LE: loop exit
PB: predicated region body
PF: predicated region fallthrough
CT: control target
= control target key end

     0   :  { %v309_v0 = vmov 0.0   ;;  %vm310_vm0 = vmmov 0   ;;  %vm57_vm1 = vcmask 261120   ;;  %vm131_vm2 = vcmask 1046528   ;;  %s387_s1 = inlined_call_operand.vmem [shape: bf16[32,30], index: 1, kind: input, shape index: {}]   ;;  %s388_s0 = inlined_call_operand.vmem [shape: bf16[16,32], index: 0, kind: input, shape index: {}]   ;;  %s389_s3 = inlined_call_operand.vmem [shape: bf16[30,20], index: 3, kind: input, shape index: {}]   ;;  %s390_s2 = inlined_call_operand.vmem [shape: f32[1,30], index: 2, kind: input, shape index: {}]   ;;  %s391_s5 = inlined_call_operand.vmem [shape: bf16[20,5], index: 5, kind: input, shape index: {}]   ;;  %s392_s4 = inlined_call_operand.vmem [shape: f32[1,20], index: 4, kind: input, shape index: {}]   ;;  %s393_s6 = inlined_call_operand.vmem [shape: f32[1,5], index: 6, kind: input, shape index: {}]   ;;  %s394_s7 = inlined_call_operand.vmem [shape: f32[16,5], index: 7, kind: output, shape index: {}]  }
   0x1   :  { %276 = vmatprep.subr.bf16.mxu0 %v309_v0  ;;  %v302_v1 = vld [vmem:[%s387_s1] sm:$0xff]   ;;  %280 = vmatprep.mubr.msk.bf16.mxu0 %vm310_vm0, %v309_v0  ;;  %v303_v2 = vld [vmem:[%s387_s1 + $0x8] sm:$0xff]   ;;  %vm127_vm3 = vcmask 244736   ;;  %vm202_vm4 = vcmask 1041408   ;;  %vm198_vm5 = vcmask 162816   ;;  %vm247_vm6 = vcmask 39936  }
   0x2   :  { %284 = vmatprep.subr.bf16.mxu1 %v309_v0  ;;  %288 = vmatprep.mubr.msk.bf16.mxu1 %vm310_vm0, %v309_v0  ;;  %v304_v3 = vld [vmem:[%s388_s0] sm:$0xff]   ;;  %v306_v5 = vld [vmem:[%s389_s3 + $0x8] sm:$0x7f]  }
   0x3   :  { %277 = vmatpush3.bf16.msra.mxu0 %v302_v1  ;;  %v305_v4 = vld [vmem:[%s389_s3] sm:$0xff]   ;;  %v133_v6 = vsel %vm131_vm2, %v306_v5, 0  ;;  %v308_v18 = vld [vmem:[%s391_s5 + $0x8] ss:$0 sps:$4 sm:$0x33]  }
   0x4   :  { %278 = vmatprep.subr.bf16.mxu0 %v309_v0  ;;  %285 = vmatpush3.bf16.msra.mxu1 %v305_v4  ;;  %v254_v7 = vld [vmem:[%s390_s2] ss:$0 sm:$0xff]  ;;  %v204_v19 = vsel %vm202_vm4, %v308_v18, 0 }
   0x5   :  { %286 = vmatprep.subr.bf16.mxu1 %v309_v0  ;;  %v307_v17 = vld [vmem:[%s391_s5] sm:$0xff]  }
   0x6   :  { %v259_v20 = vld [vmem:[%s392_s4] ss:$0 sm:$0xff] }
   0x7   :  { %279 = vmatpush3.bf16.msra.mxu0 %v303_v2  ;;  %v263_v30 = vld [vmem:[%s393_s6] ss:$0 sm:$0xff] }
   0x8   :  { %292 = vmatprep.subr.bf16.mxu0 %v309_v0  ;;  %287 = vmatpush3.bf16.msra.mxu1 %v133_v6 }
   0xa   :  { %281 = vmatmul.mubr.msk.bf16.vlgmr.msra.gmra.mrb[0].mxu0 %vm57_vm1, %v304_v3 }
   0xb   :  { %296 = vmatprep.mubr.msk.bf16.mxu0 %vm310_vm0, %v309_v0  ;;  %293 = vmatpush3.bf16.msra.mxu0 %v307_v17 }
   0xc   :  { %294 = vmatprep.subr.bf16.mxu0 %v309_v0 }
   0xf   :  { %295 = vmatpush3.bf16.msra.mxu0 %v204_v19 }
  0xdd   :  { %v95_v8 = vpop.f32.mrb[0].mxu0 }
  0xde   :  { %v96_v9 = vadd.f32 %v254_v7, %v95_v8  ;;  %v282_v10 = vpop.f32.mrb[1].mxu0 }
  0xdf   :  { %v98_v11 = vpop.f32.mrb[2].mxu0 }
  0xe0   :  { %v99_v12 = vadd.f32 %v254_v7, %v98_v11  ;;  %v283_v13 = vpop.f32.mrb[3].mxu0  ;;  %v102_v14 = vmax.f32 %v96_v9, 0.0 }
  0xe2   :  { %v103_v15 = vmax.f32 %v99_v12, 0.0 }
  0xe4   :  { %v104_v16 = vpack.c.bf16 %v103_v15, %v102_v14 }
  0xe6   :  { %289 = vmatmul.mubr.msk.bf16.vlgmr.msra.gmra.mrb[0].mxu1 %vm127_vm3, %v104_v16 }
 0x1b9   :  { %v169_v21 = vpop.f32.mrb[0].mxu1 }
 0x1ba   :  { %v170_v22 = vadd.f32 %v259_v20, %v169_v21  ;;  %v290_v23 = vpop.f32.mrb[1].mxu1 }
 0x1bb   :  { %v172_v24 = vpop.f32.mrb[2].mxu1 }
 0x1bc   :  { %v173_v25 = vadd.f32 %v259_v20, %v172_v24  ;;  %v291_v26 = vpop.f32.mrb[3].mxu1  ;;  %v176_v27 = vmax.f32 %v170_v22, 0.0 }
 0x1be   :  { %v177_v28 = vmax.f32 %v173_v25, 0.0 }
 0x1c0   :  { %v178_v29 = vpack.c.bf16 %v177_v28, %v176_v27 }
 0x1c2   :  { %297 = vmatmul.mubr.msk.bf16.vlgmr.msra.gmra.mrb[4].mxu0 %vm198_vm5, %v178_v29 }
 0x295   :  { %v240_v31 = vpop.f32.mrb[4].mxu0 }
 0x296   :  { %v241_v32 = vadd.f32 %v263_v30, %v240_v31  ;;  %v298_v33 = vpop.f32.mrb[5].mxu0 }
 0x297   :  { %v243_v34 = vpop.f32.mrb[6].mxu0 }
 0x298   :  { %248 = vst.msk [vmem:[%s394_s7] sm:$0xff] %vm247_vm6, %v241_v32  ;;  %v244_v35 = vadd.f32 %v263_v30, %v243_v34  ;;  %v299_v36 = vpop.f32.mrb[7].mxu0 }
 0x29a   :  { %249 = vst.msk [vmem:[%s394_s7 + $0x8] sm:$0xff] %vm247_vm6, %v244_v35 }

</bundles_post_ra>
